<compile_context>
chip_gen: v7x
topology: tpu7x:2x2x1
jax: 0.10.0
libtpu: 0.0.40
codegen_flags: <defaults>
</compile_context>

<pallas_src>
import functools

import jax
import jax.numpy as jnp
from jax import lax
from jax.experimental import pallas as pl
from jax.experimental.pallas import tpu as pltpu

LN_EPS = 1e-5      # PyTorch nn.LayerNorm default
_LANE = 128        # TPU lane width
_MXU = 128         # row-tile alignment (divides the 256 MXU height on v6e/v7x)


def _round_up(v, m):
    return (v + m - 1) // m * m


def _divisor_chunks(n_pad):
    """Multiples of 128 that evenly divide n_pad, descending (n_pad first)."""
    n = n_pad // _LANE
    return [m * _LANE for m in range(n, 0, -1) if n % m == 0]


def _vmem_capacity_bytes():
    """Per-core VMEM capacity; conservative 64 MiB (v7x) fallback."""
    try:
        cap = int(pltpu.get_tpu_info().vmem_capacity_bytes)
        if cap > 0:
            return cap
    except Exception:
        pass
    return 64 * 2**20


def _plan_bytes(tm, kh, d_in_p, d_hid_p, x_bytes, w_bytes):
    """VMEM plan for one grid step (double-buffered pipelined operands)."""
    single_pass = (kh == d_hid_p)
    dbl = 2                                               # auto-pipeline double-buffers
    x_io = dbl * tm * d_in_p * 2 * x_bytes                # x tile in + y tile out
    weights = dbl * w_bytes * 2 * d_in_p * kh             # W1 chunk + W2 chunk
    small = dbl * x_bytes * (kh + 3 * d_in_p)             # b1 chunk, b2, gamma, beta
    acc = 0 if single_pass else 4 * tm * d_in_p           # f32 accumulator scratch
    live = 4 * tm * (kh + d_in_p)                         # h (f32) + one f32 y temp
    return x_io + weights + small + acc + live


def _choose_plan(M, d_in_p, d_hid_p, x_bytes, w_bytes, kh_override=None):
    cap = _vmem_capacity_bytes()
    budget = int(cap * 0.70)

    # Row tiling: never bigger than the data; keep >= 2 row tiles whenever the
    # token count spans >= 2 minimum tiles so both v7x TensorCores get work.
    n128 = _round_up(max(M, 1), _MXU) // _MXU
    tm_max = _MXU if n128 < 2 else min(1024, _MXU * (n128 // 2))
    tm_cands = [t for t in (1024, 512, 256, 128) if t <= tm_max] or [_MXU]

    kh_opts = _divisor_chunks(d_hid_p)            # descending; kh_opts[0] == d_hid_p
    if kh_override is not None:
        assert kh_override % _LANE == 0 and d_hid_p % kh_override == 0
        kh_opts = [kh_override]

    choice = None
    # 1) Prefer kh == d_hid (weights grid-constant -> fetched from HBM once),
    #    with the largest row tile that fits the budget.
    if kh_opts[0] == d_hid_p:
        for tm in tm_cands:
            if _plan_bytes(tm, d_hid_p, d_in_p, d_hid_p, x_bytes, w_bytes) <= budget:
                choice = (tm, d_hid_p)
                break
    # 2) Otherwise stream d_hid: prefer the largest tm (fewest weight
    #    re-fetches from HBM), then the largest chunk that fits.
    if choice is None:
        for tm in tm_cands:
            for kh in kh_opts:
                if kh == d_hid_p and kh_override is None:
                    continue  # already tried above
                if _plan_bytes(tm, kh, d_in_p, d_hid_p, x_bytes, w_bytes) <= budget:
                    choice = (tm, kh)
                    break
            if choice is not None:
                break
    if choice is None:                             # last resort: smallest tiles
        choice = (tm_cands[-1], kh_opts[-1])

    tm, kh = choice
    plan = _plan_bytes(tm, kh, d_in_p, d_hid_p, x_bytes, w_bytes)
    vmem_limit = int(min(max(plan * 1.4, 32 * 2**20), cap * 0.85))
    return tm, kh, vmem_limit


def _layer_norm_rows(y, g, b, inv_d_in):
    """LayerNorm over the last axis of f32 `y` (padded lanes of y must be 0)."""
    s = jnp.sum(y, axis=-1, keepdims=True)
    sq = jnp.sum(y * y, axis=-1, keepdims=True)
    mean = s * inv_d_in
    var = jnp.maximum(sq * inv_d_in - mean * mean, 0.0)   # guard cancellation
    norm = (y - mean) * lax.rsqrt(var + LN_EPS)
    return norm * g.astype(jnp.float32) + b.astype(jnp.float32)


def _ffn_kernel_single(x_ref, w1_ref, b1_ref, w2_ref, b2_ref, g_ref, beta_ref,
                       o_ref, *, inv_d_in, compute_dtype):
    """Single-pass kernel: full d_hid resident, no accumulator round-trip."""
    x = x_ref[...]                                          # (tm, d_in_p)
    xc = x.astype(compute_dtype)
    h = jnp.dot(xc, w1_ref[...], preferred_element_type=jnp.float32)
    h = jnp.maximum(h + b1_ref[...].astype(jnp.float32), 0.0)
    y = jnp.dot(h.astype(compute_dtype), w2_ref[...],
                preferred_element_type=jnp.float32)
    y = y + b2_ref[...].astype(jnp.float32) + x.astype(jnp.float32)
    o_ref[...] = _layer_norm_rows(y, g_ref[...], beta_ref[...],
                                  inv_d_in).astype(o_ref.dtype)


def _ffn_kernel_stream(x_ref, w1_ref, b1_ref, w2_ref, b2_ref, g_ref, beta_ref,
                       o_ref, acc_ref, *, inv_d_in, compute_dtype):
    """Fallback kernel: d_hid streamed in chunks with a resident f32 accumulator."""
    k = pl.program_id(1)

    @pl.when(k == 0)
    def _init():
        acc_ref[...] = jnp.zeros_like(acc_ref)

    x = x_ref[...]                                          # (tm, d_in_p)
    xc = x.astype(compute_dtype)
    h = jnp.dot(xc, w1_ref[...], preferred_element_type=jnp.float32)
    h = jnp.maximum(h + b1_ref[...].astype(jnp.float32), 0.0)
    acc_ref[...] += jnp.dot(h.astype(compute_dtype), w2_ref[...],
                            preferred_element_type=jnp.float32)

    @pl.when(k == pl.num_programs(1) - 1)
    def _finalize():
        y = acc_ref[...] + b2_ref[...].astype(jnp.float32) + x.astype(jnp.float32)
        o_ref[...] = _layer_norm_rows(y, g_ref[...], beta_ref[...],
                                      inv_d_in).astype(o_ref.dtype)


@functools.partial(jax.jit, static_argnames=("compute_dtype", "kh_override"))
def position_wise_ffn(x, w1, b1, w2, b2, gamma, beta, *,
                      compute_dtype=None, kh_override=None):
    """x: [B, L, d_in]; w1: [d_in, d_hid]; w2: [d_hid, d_in] (Conv1d k=1 == Linear).

    compute_dtype: optional lower-precision MXU dtype (e.g. jnp.bfloat16) for
    the two matmuls; accumulation, residual and LayerNorm stay in f32.
    kh_override: force a d_hid chunk size (testing / manual tuning).
    """
    B, L, d_in = x.shape
    d_hid = w1.shape[1]
    M = B * L

    out_dtype = x.dtype
    cdt = jnp.dtype(compute_dtype) if compute_dtype is not None else x.dtype
    w1, w2 = w1.astype(cdt), w2.astype(cdt)
    b1, b2 = b1.astype(out_dtype), b2.astype(out_dtype)
    gamma, beta = gamma.astype(out_dtype), beta.astype(out_dtype)

    d_in_p = _round_up(d_in, _LANE)
    d_hid_p = _round_up(d_hid, _LANE)
    tm, kh, vmem_limit = _choose_plan(
        M, d_in_p, d_hid_p,
        jnp.dtype(out_dtype).itemsize, jnp.dtype(cdt).itemsize, kh_override)
    single_pass = (kh == d_hid_p)
    M_pad = _round_up(M, tm)

    x2 = jnp.pad(x.reshape(M, d_in), ((0, M_pad - M), (0, d_in_p - d_in)))
    w1p = jnp.pad(w1, ((0, d_in_p - d_in), (0, d_hid_p - d_hid)))
    w2p = jnp.pad(w2, ((0, d_hid_p - d_hid), (0, d_in_p - d_in)))
    b1p = jnp.pad(b1, (0, d_hid_p - d_hid)).reshape(1, d_hid_p)
    b2p = jnp.pad(b2, (0, d_in_p - d_in)).reshape(1, d_in_p)
    gp = jnp.pad(gamma, (0, d_in_p - d_in)).reshape(1, d_in_p)
    btp = jnp.pad(beta, (0, d_in_p - d_in)).reshape(1, d_in_p)

    if single_pass:
        grid = (M_pad // tm,)
        kernel = functools.partial(_ffn_kernel_single,
                                   inv_d_in=1.0 / d_in, compute_dtype=cdt)
        in_specs = [
            pl.BlockSpec((tm, d_in_p), lambda i: (i, 0)),         # x tile
            pl.BlockSpec((d_in_p, d_hid_p), lambda i: (0, 0)),    # W1 (resident)
            pl.BlockSpec((1, d_hid_p), lambda i: (0, 0)),         # b1
            pl.BlockSpec((d_hid_p, d_in_p), lambda i: (0, 0)),    # W2 (resident)
            pl.BlockSpec((1, d_in_p), lambda i: (0, 0)),          # b2
            pl.BlockSpec((1, d_in_p), lambda i: (0, 0)),          # gamma
            pl.BlockSpec((1, d_in_p), lambda i: (0, 0)),          # beta
        ]
        out_spec = pl.BlockSpec((tm, d_in_p), lambda i: (i, 0))
        scratch = ()
        dims = ("parallel",)
        weight_fetches = 1
    else:
        grid = (M_pad // tm, d_hid_p // kh)
        kernel = functools.partial(_ffn_kernel_stream,
                                   inv_d_in=1.0 / d_in, compute_dtype=cdt)
        in_specs = [
            pl.BlockSpec((tm, d_in_p), lambda i, k: (i, 0)),      # x tile (resident over k)
            pl.BlockSpec((d_in_p, kh), lambda i, k: (0, k)),      # W1 chunk (streams over k)
            pl.BlockSpec((1, kh), lambda i, k: (0, k)),           # b1 chunk
            pl.BlockSpec((kh, d_in_p), lambda i, k: (k, 0)),      # W2 chunk (streams over k)
            pl.BlockSpec((1, d_in_p), lambda i, k: (0, 0)),       # b2
            pl.BlockSpec((1, d_in_p), lambda i, k: (0, 0)),       # gamma
            pl.BlockSpec((1, d_in_p), lambda i, k: (0, 0)),       # beta
        ]
        out_spec = pl.BlockSpec((tm, d_in_p), lambda i, k: (i, 0))
        scratch = (pltpu.VMEM((tm, d_in_p), jnp.float32),)
        dims = ("parallel", "arbitrary")
        weight_fetches = M_pad // tm                              # weights re-streamed per row tile

    io_bytes = (x2.size + M_pad * d_in_p) * jnp.dtype(out_dtype).itemsize
    weight_bytes = (w1p.size + w2p.size) * jnp.dtype(cdt).itemsize * weight_fetches
    small_bytes = (b1p.size + b2p.size + gp.size + btp.size) * jnp.dtype(out_dtype).itemsize
    cost = pl.CostEstimate(
        flops=4 * M_pad * d_in_p * d_hid_p,
        transcendentals=M_pad,
        bytes_accessed=int(io_bytes + weight_bytes + small_bytes),
    )

    out = pl.pallas_call(
        kernel,
        out_shape=jax.ShapeDtypeStruct((M_pad, d_in_p), out_dtype),
        grid=grid,
        in_specs=in_specs,
        out_specs=out_spec,
        scratch_shapes=scratch,
        compiler_params=pltpu.CompilerParams(
            dimension_semantics=dims,
            vmem_limit_bytes=vmem_limit),
        cost_estimate=cost,
    )(x2, w1p, b1p, w2p, b2p, gp, btp)

    return out[:M, :d_in].reshape(B, L, d_in)


def _reference(x, w1, b1, w2, b2, gamma, beta):
    x, w1, b1, w2, b2, gamma, beta = (
        a.astype(jnp.float32) for a in (x, w1, b1, w2, b2, gamma, beta))
    h = jnp.maximum(x @ w1 + b1, 0.0)
    y = h @ w2 + b2 + x
    mean = jnp.mean(y, axis=-1, keepdims=True)
    var = jnp.mean((y - mean) ** 2, axis=-1, keepdims=True)
    return (y - mean) / jnp.sqrt(var + LN_EPS) * gamma + beta


if __name__ == "__main__":
    def _make_inputs(key, B, L, d_in, d_hid, dtype):
        ks = jax.random.split(key, 5)
        x = jax.random.normal(ks[0], (B, L, d_in), jnp.float32)
        w1 = jax.random.normal(ks[1], (d_in, d_hid), jnp.float32) * 0.1
        b1 = jax.random.normal(ks[2], (d_hid,), jnp.float32) * 0.1
        w2 = jax.random.normal(ks[3], (d_hid, d_in), jnp.float32) * 0.1
        b2 = jax.random.normal(ks[4], (d_in,), jnp.float32) * 0.1
        gamma = jnp.ones((d_in,), jnp.float32)   # PyTorch LayerNorm default init
        beta = jnp.zeros((d_in,), jnp.float32)
        return tuple(a.astype(dtype) for a in (x, w1, b1, w2, b2, gamma, beta))

    key = jax.random.PRNGKey(0)

    # 1) Lane-aligned f32 case: single-pass kernel, weights resident in VMEM.
    args = _make_inputs(key, 2, 8, 128, 256, jnp.float32)
    out = jax.block_until_ready(position_wise_ffn(*args))
    ref = _reference(*args)
    assert out.shape == (2, 8, 128)
    assert jnp.allclose(out, ref, atol=1e-3, rtol=1e-3)

    # 2) Unaligned dims exercise the zero-padding + padded-lane LayerNorm path.
    args = _make_inputs(key, 2, 8, 32, 48, jnp.float32)
    out = jax.block_until_ready(position_wise_ffn(*args))
    ref = _reference(*args)
    assert out.shape == (2, 8, 32)
    assert jnp.allclose(out, ref, atol=1e-3, rtol=1e-3)

    # 3) bf16 activations/weights: matmuls run on the MXU in bf16, LN stays f32.
    args = _make_inputs(key, 2, 8, 128, 256, jnp.bfloat16)
    out = jax.block_until_ready(position_wise_ffn(*args))
    ref = _reference(*args)
    assert out.dtype == jnp.bfloat16
    assert jnp.allclose(out.astype(jnp.float32), ref, atol=1e-1, rtol=1e-1)

    # 4) Forced d_hid streaming exercises the fallback accumulator kernel.
    args = _make_inputs(key, 2, 8, 128, 256, jnp.float32)
    out = jax.block_until_ready(position_wise_ffn(*args, kh_override=128))
    ref = _reference(*args)
    assert jnp.allclose(out, ref, atol=1e-3, rtol=1e-3)

    # 5) Opt-in bf16 compute path for f32 inputs (f32 accumulation + f32 LN).
    out = jax.block_until_ready(
        position_wise_ffn(*args, compute_dtype=jnp.bfloat16))
    assert out.dtype == jnp.float32
    assert jnp.allclose(out, ref, atol=1e-1, rtol=1e-1)

    print("KERNEL_OK")
</pallas_src>

<mosaic_0001>
module attributes {stable_mosaic.version = 11 : i64} {
  func.func @_ffn_kernel_single(%arg0: i32, %arg1: memref<128x128xf32, #tpu.memory_space<vmem>>, %arg2: memref<128x256xf32, #tpu.memory_space<vmem>>, %arg3: memref<1x256xf32, #tpu.memory_space<vmem>>, %arg4: memref<256x128xf32, #tpu.memory_space<vmem>>, %arg5: memref<1x128xf32, #tpu.memory_space<vmem>>, %arg6: memref<1x128xf32, #tpu.memory_space<vmem>>, %arg7: memref<1x128xf32, #tpu.memory_space<vmem>>, %arg8: memref<128x128xf32, #tpu.memory_space<vmem>>) attributes {dimension_semantics = [#tpu.dimension_semantics<parallel>], iteration_bounds = array<i64: 1>, scalar_prefetch = 0 : i64, scratch_operands = 0 : i64, tpu.core_type = #tpu.core_type<tc>, window_params = [{transform_indices = @transform_0, window_bounds = array<i64: 128, 128>}, {pipeline_mode = #tpu.pipeline_mode<synchronous>, transform_indices = @transform_1, window_bounds = array<i64: 128, 256>}, {pipeline_mode = #tpu.pipeline_mode<synchronous>, transform_indices = @transform_2, window_bounds = array<i64: 1, 256>}, {pipeline_mode = #tpu.pipeline_mode<synchronous>, transform_indices = @transform_3, window_bounds = array<i64: 256, 128>}, {pipeline_mode = #tpu.pipeline_mode<synchronous>, transform_indices = @transform_4, window_bounds = array<i64: 1, 128>}, {pipeline_mode = #tpu.pipeline_mode<synchronous>, transform_indices = @transform_5, window_bounds = array<i64: 1, 128>}, {pipeline_mode = #tpu.pipeline_mode<synchronous>, transform_indices = @transform_6, window_bounds = array<i64: 1, 128>}, {transform_indices = @transform_7, window_bounds = array<i64: 128, 128>}]} {
    %c0 = arith.constant 0 : index
    %c0_0 = arith.constant 0 : index
    %0 = vector.load %arg1[%c0, %c0_0] : memref<128x128xf32, #tpu.memory_space<vmem>>, vector<128x128xf32>
    %c0_1 = arith.constant 0 : index
    %c0_2 = arith.constant 0 : index
    %1 = vector.load %arg2[%c0_1, %c0_2] : memref<128x256xf32, #tpu.memory_space<vmem>>, vector<128x256xf32>
    %cst = arith.constant dense<0.000000e+00> : vector<128x256xf32>
    %2 = tpu.matmul %0, %1, %cst {dimension_numbers = #tpu.dot_dimension_numbers<[1], [0], [0], [1], [0, 0, 1, 1], [], []>} : vector<128x128xf32>, vector<128x256xf32>, vector<128x256xf32> -> vector<128x256xf32>
    %c0_3 = arith.constant 0 : index
    %c0_4 = arith.constant 0 : index
    %3 = vector.load %arg3[%c0_3, %c0_4] : memref<1x256xf32, #tpu.memory_space<vmem>>, vector<1x256xf32>
    %4 = vector.broadcast %3 : vector<1x256xf32> to vector<128x256xf32>
    %5 = arith.addf %2, %4 : vector<128x256xf32>
    %cst_5 = arith.constant 0.000000e+00 : f32
    %6 = vector.broadcast %cst_5 : f32 to vector<128x256xf32>
    %7 = arith.maximumf %5, %6 : vector<128x256xf32>
    %c0_6 = arith.constant 0 : index
    %c0_7 = arith.constant 0 : index
    %8 = vector.load %arg4[%c0_6, %c0_7] : memref<256x128xf32, #tpu.memory_space<vmem>>, vector<256x128xf32>
    %cst_8 = arith.constant dense<0.000000e+00> : vector<128x128xf32>
    %9 = tpu.matmul %7, %8, %cst_8 {dimension_numbers = #tpu.dot_dimension_numbers<[1], [0], [0], [1], [0, 0, 1, 1], [], []>} : vector<128x256xf32>, vector<256x128xf32>, vector<128x128xf32> -> vector<128x128xf32>
    %c0_9 = arith.constant 0 : index
    %c0_10 = arith.constant 0 : index
    %10 = vector.load %arg5[%c0_9, %c0_10] : memref<1x128xf32, #tpu.memory_space<vmem>>, vector<1x128xf32>
    %11 = vector.broadcast %10 : vector<1x128xf32> to vector<128x128xf32>
    %12 = arith.addf %9, %11 : vector<128x128xf32>
    %13 = arith.addf %12, %0 : vector<128x128xf32>
    %c0_11 = arith.constant 0 : index
    %c0_12 = arith.constant 0 : index
    %14 = vector.load %arg6[%c0_11, %c0_12] : memref<1x128xf32, #tpu.memory_space<vmem>>, vector<1x128xf32>
    %c0_13 = arith.constant 0 : index
    %c0_14 = arith.constant 0 : index
    %15 = vector.load %arg7[%c0_13, %c0_14] : memref<1x128xf32, #tpu.memory_space<vmem>>, vector<1x128xf32>
    %cst_15 = arith.constant dense<0.000000e+00> : vector<128xf32>
    %16 = vector.multi_reduction <add>, %13, %cst_15 [1] : vector<128x128xf32> to vector<128xf32>
    %17 = vector.shape_cast %16 : vector<128xf32> to vector<128x1xf32>
    %18 = arith.mulf %13, %13 : vector<128x128xf32>
    %cst_16 = arith.constant dense<0.000000e+00> : vector<128xf32>
    %19 = vector.multi_reduction <add>, %18, %cst_16 [1] : vector<128x128xf32> to vector<128xf32>
    %20 = vector.shape_cast %19 : vector<128xf32> to vector<128x1xf32>
    %cst_17 = arith.constant 7.812500e-03 : f32
    %21 = vector.broadcast %cst_17 : f32 to vector<128x1xf32>
    %22 = arith.mulf %17, %21 : vector<128x1xf32>
    %cst_18 = arith.constant 7.812500e-03 : f32
    %23 = vector.broadcast %cst_18 : f32 to vector<128x1xf32>
    %24 = arith.mulf %20, %23 : vector<128x1xf32>
    %25 = arith.mulf %22, %22 : vector<128x1xf32>
    %26 = arith.subf %24, %25 : vector<128x1xf32>
    %cst_19 = arith.constant 0.000000e+00 : f32
    %27 = vector.broadcast %cst_19 : f32 to vector<128x1xf32>
    %28 = arith.maximumf %26, %27 : vector<128x1xf32>
    %29 = vector.broadcast %22 : vector<128x1xf32> to vector<128x128xf32>
    %30 = arith.subf %13, %29 : vector<128x128xf32>
    %cst_20 = arith.constant 9.99999974E-6 : f32
    %31 = vector.broadcast %cst_20 : f32 to vector<128x1xf32>
    %32 = arith.addf %28, %31 : vector<128x1xf32>
    %33 = math.rsqrt %32 : vector<128x1xf32>
    %34 = vector.broadcast %33 : vector<128x1xf32> to vector<128x128xf32>
    %35 = arith.mulf %30, %34 : vector<128x128xf32>
    %36 = vector.broadcast %14 : vector<1x128xf32> to vector<128x128xf32>
    %37 = arith.mulf %35, %36 : vector<128x128xf32>
    %38 = vector.broadcast %15 : vector<1x128xf32> to vector<128x128xf32>
    %39 = arith.addf %37, %38 : vector<128x128xf32>
    %c0_21 = arith.constant 0 : index
    %c0_22 = arith.constant 0 : index
    %40 = vector.load %arg8[%c0_21, %c0_22] : memref<128x128xf32, #tpu.memory_space<vmem>>, vector<128x128xf32>
    tpu.vector_store %arg8[%c0_21, %c0_22], %39 {strides = array<i32>} : memref<128x128xf32, #tpu.memory_space<vmem>>, vector<128x128xf32>,
    return
  }
  func.func @transform_0(%arg0: i32) -> (i32, i32) {
    %c0_i32 = arith.constant 0 : i32
    %c0_i32_0 = arith.constant 0 : i32
    return %arg0, %c0_i32 : i32, i32
  }
  func.func @transform_1(%arg0: i32) -> (i32, i32) {
    %c0_i32 = arith.constant 0 : i32
    %c0_i32_0 = arith.constant 0 : i32
    %c0_i32_1 = arith.constant 0 : i32
    return %c0_i32, %c0_i32_0 : i32, i32
  }
  func.func @transform_2(%arg0: i32) -> (i32, i32) {
    %c0_i32 = arith.constant 0 : i32
    %c0_i32_0 = arith.constant 0 : i32
    %c0_i32_1 = arith.constant 0 : i32
    return %c0_i32, %c0_i32_0 : i32, i32
  }
  func.func @transform_3(%arg0: i32) -> (i32, i32) {
    %c0_i32 = arith.constant 0 : i32
    %c0_i32_0 = arith.constant 0 : i32
    %c0_i32_1 = arith.constant 0 : i32
    return %c0_i32, %c0_i32_0 : i32, i32
  }
  func.func @transform_4(%arg0: i32) -> (i32, i32) {
    %c0_i32 = arith.constant 0 : i32
    %c0_i32_0 = arith.constant 0 : i32
    %c0_i32_1 = arith.constant 0 : i32
    return %c0_i32, %c0_i32_0 : i32, i32
  }
  func.func @transform_5(%arg0: i32) -> (i32, i32) {
    %c0_i32 = arith.constant 0 : i32
    %c0_i32_0 = arith.constant 0 : i32
    %c0_i32_1 = arith.constant 0 : i32
    return %c0_i32, %c0_i32_0 : i32, i32
  }
  func.func @transform_6(%arg0: i32) -> (i32, i32) {
    %c0_i32 = arith.constant 0 : i32
    %c0_i32_0 = arith.constant 0 : i32
    %c0_i32_1 = arith.constant 0 : i32
    return %c0_i32, %c0_i32_0 : i32, i32
  }
  func.func @transform_7(%arg0: i32) -> (i32, i32) {
    %c0_i32 = arith.constant 0 : i32
    %c0_i32_0 = arith.constant 0 : i32
    return %arg0, %c0_i32 : i32, i32
  }
}

</mosaic_0001>

<bundles_post_ra>
// kernel: position_wise_ffn.1
= control target key start
LH: loop header
LB: loop body
LE: loop exit
PB: predicated region body
PF: predicated region fallthrough
CT: control target
= control target key end

     0   :  { %12 = vsyncpa [#allocation3], 0  ;;  %s1533_s0 = inlined_call_operand.vmem [shape: f32[128,128], index: 0, kind: input, shape index: {}]   ;;  %s1534_s1 = inlined_call_operand.hbm [shape: f32[128,256], index: 1, kind: input, shape index: {}]   ;;  %s1535_s2 = inlined_call_operand.vmem [shape: f32[1,256], index: 2, kind: input, shape index: {}]   ;;  %s1536_s3 = inlined_call_operand.hbm [shape: f32[256,128], index: 3, kind: input, shape index: {}]   ;;  %s1537_s4 = inlined_call_operand.vmem [shape: f32[1,128], index: 4, kind: input, shape index: {}]   ;;  %s1538_s5 = inlined_call_operand.vmem [shape: f32[1,128], index: 5, kind: input, shape index: {}]   ;;  %s1539_s6 = inlined_call_operand.vmem [shape: f32[1,128], index: 6, kind: input, shape index: {}]   ;;  %s1540_s7 = inlined_call_operand.vmem [shape: f32[128,128], index: 7, kind: output, shape index: {}]  }
   0x1   :  { %13 = vsyncpa [#allocation5], 0  ;;  %s1033_s24 = smov [#allocation2]   ;;  %s985_s28 = scalar_lea.hbm %s1534_s1, 4096 }
   0x2   :  { %s21_s25 = sshll.u32 %s1033_s24, 4  ;;  %p986_p0 = scmp.ne.s32.totalorder %s1534_s1, %s985_s28  ;;  %s22_s25 = int_to_ptr.vmem [resolvable:$true] %s21_s25 }
   0x3   :  { %p989_p1 = scmp.lt.u32.totalorder %s985_s28, %s1534_s1 }
   0x5   :  { %p991_p2 = pnand %p989_p1, %p986_p0 }
   0x7   :  { %994 = shalt.err (!%p991_p2)
}
   0x8   :  { %s995_s10 = scalar_lea.vmem %s22_s25, 4096  ;;  %p1000_p4 = scmp.lt.s32.totalorder %s22_s25, %s22_s25 }
   0x9   :  { %p996_p3 = scmp.ne.s32.totalorder %s22_s25, %s995_s10  ;;  %p1001_p5 = scmp.lt.s32.totalorder %s995_s10, %s995_s10 }
   0xb   :  { %p1002_p6 = por %p1001_p5, %p1000_p4 }
   0xd   :  { %p1003_p7 = pnand %p1002_p6, %p996_p3 }
   0xf   :  { %1006 = shalt.err (!%p1003_p7)
}
  0x10   :  { %s1034_s11 = smov 256   ;;  %s1035_s12 = smov 16  }
  0x11   :  { %27 = dma.hbm_to_vmem [thread:$0]  %s1534_s1, 4096, %s22_s25, [#allocation3], %s1034_s11, %s1034_s11, %s1035_s12  }
  0x12   :  { %s1036_s15 = smov [#allocation4]   ;;  %s1007_s19 = scalar_lea.hbm %s1536_s3, 4096 }
  0x13   :  { %s35_s16 = sshll.u32 %s1036_s15, 4  ;;  %p1008_p8 = scmp.ne.s32.totalorder %s1536_s3, %s1007_s19  ;;  %s36_s16 = int_to_ptr.vmem [resolvable:$true] %s35_s16 }
  0x14   :  { %p1011_p9 = scmp.lt.u32.totalorder %s1007_s19, %s1536_s3 }
  0x16   :  { %p1013_p10 = pnand %p1011_p9, %p1008_p8 }
  0x18   :  { %1016 = shalt.err (!%p1013_p10)
}
  0x19   :  { %s1017_s24 = scalar_lea.vmem %s36_s16, 4096  ;;  %p1022_p12 = scmp.lt.s32.totalorder %s36_s16, %s36_s16 }
  0x1a   :  { %p1018_p11 = scmp.ne.s32.totalorder %s36_s16, %s1017_s24  ;;  %p1023_p13 = scmp.lt.s32.totalorder %s1017_s24, %s1017_s24 }
  0x1c   :  { %p1024_p0 = por %p1023_p13, %p1022_p12 }
  0x1e   :  { %p1025_p1 = pnand %p1024_p0, %p1018_p11 }
  0x20   :  { %1028 = shalt.err (!%p1025_p1)
}
  0x21   :  { %s1037_s1 = smov 128   ;;  %s1038_s25 = smov 8  }
  0x22   :  { %41 = dma.hbm_to_vmem [thread:$0]  %s1536_s3, 4096, %s36_s16, [#allocation5], %s1037_s1, %s1037_s1, %s1038_s25  }
  0x23   :  { %1029 = dma.done.wait [#allocation3], 4096  }
  0x24   :  { %1030 = vsyncadd [#allocation3], 4294963200 }
  0x25   :  { %1031 = dma.done.wait [#allocation5], 4096  }
  0x26   :  { %1032 = vsyncadd [#allocation5], 4294963200  ;;  %v1039_v0 = vmov 0.0   ;;  %v71_v1 = vld [vmem:[#allocation2 + $0x8] sm:$0xff]  ;;  %v73_v2 = vld [vmem:[#allocation2 + $0x18] sm:$0xff] }
  0x27   :  { %178 = vmatprep.mubr.f32.mxu0 %v1039_v0  ;;  %v70_v3 = vld [vmem:[#allocation2] sm:$0xff]  ;;  %v882_v4 = vpack.c.bf16 %v73_v2, %v71_v1  ;;  %v72_v5 = vld [vmem:[#allocation2 + $0x10] sm:$0xff]  ;;  %v75_v6 = vld [vmem:[#allocation2 + $0x28] sm:$0xff] }
  0x28   :  { %v77_v7 = vld [vmem:[#allocation2 + $0x38] sm:$0xff]  ;;  %v884_v8 = vpack.c.bf16 %v72_v5, %v70_v3  ;;  %v74_v10 = vld [vmem:[#allocation2 + $0x20] sm:$0xff]  ;;  %v76_v11 = vld [vmem:[#allocation2 + $0x30] sm:$0xff] }
  0x29   :  { %v886_v9 = vpack.c.bf16 %v77_v7, %v75_v6  ;;  %v79_v12 = vld [vmem:[#allocation2 + $0x48] sm:$0xff]  ;;  %883 = vmatprep.subr.bf16.mxu0 %v882_v4  ;;  %v81_v13 = vld [vmem:[#allocation2 + $0x58] sm:$0xff]  ;;  %v888_v14 = vpack.c.bf16 %v76_v11, %v74_v10  ;;  %v78_v16 = vld [vmem:[#allocation2 + $0x40] sm:$0xff] }
  0x2a   :  { %885 = vmatpush1.bf16.msra.mxu0 %v884_v8  ;;  %v890_v15 = vpack.c.bf16 %v81_v13, %v79_v12  ;;  %v80_v17 = vld [vmem:[#allocation2 + $0x50] sm:$0xff]  ;;  %v83_v18 = vld [vmem:[#allocation2 + $0x68] sm:$0xff]  ;;  %v85_v19 = vld [vmem:[#allocation2 + $0x78] sm:$0xff] }
  0x2b   :  { %887 = vmatprep.subr.bf16.mxu0 %v886_v9  ;;  %v892_v20 = vpack.c.bf16 %v80_v17, %v78_v16  ;;  %v894_v21 = vpack.c.bf16 %v85_v19, %v83_v18  ;;  %v82_v22 = vld [vmem:[#allocation2 + $0x60] sm:$0xff]  ;;  %v84_v23 = vld [vmem:[#allocation2 + $0x70] sm:$0xff]  ;;  %v87_v24 = vld [vmem:[#allocation2 + $0x88] sm:$0xff] }
  0x2c   :  { %v89_v25 = vld [vmem:[#allocation2 + $0x98] sm:$0xff]  ;;  %v896_v26 = vpack.c.bf16 %v84_v23, %v82_v22  ;;  %v86_v28 = vld [vmem:[#allocation2 + $0x80] sm:$0xff]  ;;  %v88_v29 = vld [vmem:[#allocation2 + $0x90] sm:$0xff] }
  0x2d   :  { %v898_v27 = vpack.c.bf16 %v89_v25, %v87_v24  ;;  %v91_v30 = vld [vmem:[#allocation2 + $0xa8] sm:$0xff]  ;;  %v93_v31 = vld [vmem:[#allocation2 + $0xb8] sm:$0xff]  ;;  %v90_v32 = vld [vmem:[#allocation2 + $0xa0] sm:$0xff]  ;;  %v900_v34 = vpack.c.bf16 %v88_v29, %v86_v28 }
  0x2e   :  { %889 = vmatpush1.bf16.msra.mxu0 %v888_v14  ;;  %v92_v33 = vld [vmem:[#allocation2 + $0xb0] sm:$0xff]  ;;  %v95_v35 = vld [vmem:[#allocation2 + $0xc8] sm:$0xff]  ;;  %v97_v36 = vld [vmem:[#allocation2 + $0xd8] sm:$0xff]  ;;  %v902_v40 = vpack.c.bf16 %v93_v31, %v91_v30 }
  0x2f   :  { %891 = vmatprep.subr.bf16.mxu0 %v890_v15  ;;  %v323_v37 = vld [vmem:[#allocation4 + $0x80] sm:$0xff]  ;;  %v324_v38 = vld [vmem:[#allocation4 + $0x88] sm:$0xff]  ;;  %v325_v43 = vld [vmem:[#allocation4 + $0x90] sm:$0xff]  ;;  %v904_v51 = vpack.c.bf16 %v92_v33, %v90_v32  ;;  %v906_v55 = vpack.c.bf16 %v97_v36, %v95_v35 }
  0x30   :  { %v307_v39 = vld [vmem:[#allocation4] sm:$0xff]  ;;  %v914_v41 = vpack.c.bf16 %v324_v38, %v323_v37  ;;  %v308_v42 = vld [vmem:[#allocation4 + $0x8] sm:$0xff]  ;;  %v326_v44 = vld [vmem:[#allocation4 + $0x98] sm:$0xff] }
  0x31   :  { %v916_v45 = vpack.c.bf16 %v308_v42, %v307_v39  ;;  %v918_v46 = vpack.c.bf16 %v326_v44, %v325_v43  ;;  %v309_v47 = vld [vmem:[#allocation4 + $0x10] sm:$0xff]  ;;  %v310_v48 = vld [vmem:[#allocation4 + $0x18] sm:$0xff]  ;;  %v327_v49 = vld [vmem:[#allocation4 + $0xa0] sm:$0xff] }
  0x32   :  { %893 = vmatpush1.bf16.msra.mxu0 %v892_v20  ;;  %915 = vmatprep.subr.bf16.mxu1 %v914_v41  ;;  %v328_v50 = vld [vmem:[#allocation4 + $0xa8] sm:$0xff]  ;;  %v94_v52 = vld [vmem:[#allocation2 + $0xc0] sm:$0xff]  ;;  %v96_v53 = vld [vmem:[#allocation2 + $0xd0] sm:$0xff]  ;;  %v920_v54 = vpack.c.bf16 %v310_v48, %v309_v47 }
  0x33   :  { %895 = vmatprep.subr.bf16.mxu0 %v894_v21  ;;  %917 = vmatpush3.bf16.msra.mxu1 %v916_v45  ;;  %v99_v56 = vld [vmem:[#allocation2 + $0xe8] sm:$0xff]  ;;  %v922_v57 = vpack.c.bf16 %v328_v50, %v327_v49  ;;  %v311_v58 = vld [vmem:[#allocation4 + $0x20] sm:$0xff]  ;;  %v101_v60 = vld [vmem:[#allocation2 + $0xf8] sm:$0xff]  ;;  %v908_v63 = vpack.c.bf16 %v96_v53, %v94_v52 }
  0x34   :  { %919 = vmatprep.subr.bf16.mxu1 %v918_v46  ;;  %v312_v59 = vld [vmem:[#allocation4 + $0x28] sm:$0xff]  ;;  %v329_v61 = vld [vmem:[#allocation4 + $0xb0] sm:$0xff]  ;;  %v330_v62 = vld [vmem:[#allocation4 + $0xb8] sm:$0xff]  ;;  %v910_v3 = vpack.c.bf16 %v101_v60, %v99_v56 }
  0x35   :  { %v98_v1 = vld [vmem:[#allocation2 + $0xe0] sm:$0xff]  ;;  %v924_v2 = vpack.c.bf16 %v312_v59, %v311_v58  ;;  %v100_v4 = vld [vmem:[#allocation2 + $0xf0] sm:$0xff]  ;;  %v926_v5 = vpack.c.bf16 %v330_v62, %v329_v61  ;;  %v314_v7 = vld [vmem:[#allocation4 + $0x38] sm:$0xff] }
  0x36   :  { %897 = vmatpush1.bf16.msra.mxu0 %v896_v26  ;;  %v313_v6 = vld [vmem:[#allocation4 + $0x30] sm:$0xff]  ;;  %v331_v8 = vld [vmem:[#allocation4 + $0xc0] sm:$0xff]  ;;  %v332_v9 = vld [vmem:[#allocation4 + $0xc8] sm:$0xff]  ;;  %v912_v10 = vpack.c.bf16 %v100_v4, %v98_v1 }
  0x37   :  { %899 = vmatprep.subr.bf16.mxu0 %v898_v27  ;;  %921 = vmatpush3.bf16.msra.mxu1 %v920_v54  ;;  %v928_v11 = vpack.c.bf16 %v314_v7, %v313_v6  ;;  %v930_v12 = vpack.c.bf16 %v332_v9, %v331_v8  ;;  %v315_v13 = vld [vmem:[#allocation4 + $0x40] sm:$0xff]  ;;  %v316_v14 = vld [vmem:[#allocation4 + $0x48] sm:$0xff]  ;;  %v333_v15 = vld [vmem:[#allocation4 + $0xd0] sm:$0xff] }
  0x38   :  { %923 = vmatprep.subr.bf16.mxu1 %v922_v57  ;;  %v334_v16 = vld [vmem:[#allocation4 + $0xd8] sm:$0xff]  ;;  %v1108_v17 = vld [vmem:[%s1533_s0] sm:$0xff]  ;;  %v932_v18 = vpack.c.bf16 %v316_v14, %v315_v13  ;;  %v317_v20 = vld [vmem:[#allocation4 + $0x50] sm:$0xff] }
  0x39   :  { %v934_v19 = vpack.c.bf16 %v334_v16, %v333_v15  ;;  %v318_v21 = vld [vmem:[#allocation4 + $0x58] sm:$0xff]  ;;  %v335_v22 = vld [vmem:[#allocation4 + $0xe0] sm:$0xff]  ;;  %v336_v23 = vld [vmem:[#allocation4 + $0xe8] sm:$0xff] }
  0x3a   :  { %901 = vmatpush1.bf16.msra.mxu0 %v900_v34  ;;  %v1115_v24 = vld [vmem:[%s1533_s0 + $0x8] sm:$0xff]  ;;  %v936_v25 = vpack.c.bf16 %v318_v21, %v317_v20  ;;  %v938_v26 = vpack.c.bf16 %v336_v23, %v335_v22  ;;  %v1122_v27 = vld [vmem:[%s1533_s0 + $0x10] sm:$0xff]  ;;  %v1129_v28 = vld [vmem:[%s1533_s0 + $0x18] sm:$0xff] }
  0x3b   :  { %903 = vmatprep.subr.bf16.mxu0 %v902_v40  ;;  %925 = vmatpush3.bf16.msra.mxu1 %v924_v2  ;;  %v1136_v29 = vld [vmem:[%s1533_s0 + $0x20] sm:$0xff]  ;;  %v1143_v30 = vld [vmem:[%s1533_s0 + $0x28] sm:$0xff]  ;;  %v1150_v31 = vld [vmem:[%s1533_s0 + $0x30] sm:$0xff] }
  0x3c   :  { %927 = vmatprep.subr.bf16.mxu1 %v926_v5  ;;  %v1157_v32 = vld [vmem:[%s1533_s0 + $0x38] sm:$0xff]  ;;  %v1164_v33 = vld [vmem:[%s1533_s0 + $0x40] sm:$0xff]  ;;  %v1171_v34 = vld [vmem:[%s1533_s0 + $0x48] sm:$0xff] }
  0x3d   :  { %v1178_v35 = vld [vmem:[%s1533_s0 + $0x50] sm:$0xff]  ;;  %v1185_v36 = vld [vmem:[%s1533_s0 + $0x58] sm:$0xff]  ;;  %v1192_v37 = vld [vmem:[%s1533_s0 + $0x60] sm:$0xff] }
  0x3e   :  { %905 = vmatpush1.bf16.msra.mxu0 %v904_v51  ;;  %v1199_v38 = vld [vmem:[%s1533_s0 + $0x68] sm:$0xff]  ;;  %v1206_v39 = vld [vmem:[%s1533_s0 + $0x70] sm:$0xff]  ;;  %v1213_v40 = vld [vmem:[%s1533_s0 + $0x78] sm:$0xff] }
  0x3f   :  { %907 = vmatprep.subr.bf16.mxu0 %v906_v55  ;;  %929 = vmatpush3.bf16.msra.mxu1 %v928_v11  ;;  %v319_v41 = vld [vmem:[#allocation4 + $0x60] sm:$0xff]  ;;  %v320_v42 = vld [vmem:[#allocation4 + $0x68] sm:$0xff]  ;;  %v337_v44 = vld [vmem:[#allocation4 + $0xf0] sm:$0xff] }
  0x40   :  { %931 = vmatprep.subr.bf16.mxu1 %v930_v12  ;;  %v940_v43 = vpack.c.bf16 %v320_v42, %v319_v41  ;;  %v338_v45 = vld [vmem:[#allocation4 + $0xf8] sm:$0xff]  ;;  %v321_v47 = vld [vmem:[#allocation4 + $0x70] sm:$0xff]  ;;  %v102_v52 = vld [vmem:[%s1535_s2] sm:$0x3] }
  0x41   :  { %v942_v46 = vpack.c.bf16 %v338_v45, %v337_v44  ;;  %v322_v48 = vld [vmem:[#allocation4 + $0x78] sm:$0xff] }
  0x42   :  { %909 = vmatpush1.bf16.msra.mxu0 %v908_v63  ;;  %v944_v49 = vpack.c.bf16 %v322_v48, %v321_v47 }
  0x43   :  { %911 = vmatprep.subr.bf16.mxu0 %v910_v3  ;;  %933 = vmatpush3.bf16.msra.mxu1 %v932_v18 }
  0x44   :  { %935 = vmatprep.subr.bf16.mxu1 %v934_v19 }
  0x46   :  { %913 = vmatpush1.bf16.msra.mxu0 %v912_v10 }
  0x47   :  { %937 = vmatpush3.bf16.msra.mxu1 %v936_v25 }
  0x48   :  { %939 = vmatprep.subr.bf16.mxu1 %v938_v26 }
  0x49   :  { %179 = vmatmul.mubr.f32.vlgmr.msra.gmra.mrb[0].mxu0 %v1108_v17 }
  0x4a   :  { %184 = vmatprep.mubr.f32.mxu0 %v1039_v0 }
  0x4b   :  { %941 = vmatpush3.bf16.msra.mxu1 %v940_v43 }
  0x4c   :  { %943 = vmatprep.subr.bf16.mxu1 %v942_v46 }
  0x4d   :  { %185 = vmatmul.mubr.f32.gmra.mrb[2].mxu0 %v1115_v24 }
  0x4e   :  { %190 = vmatprep.mubr.f32.mxu0 %v1039_v0 }
  0x4f   :  { %945 = vmatpush3.bf16.msra.mxu1 %v944_v49 }
  0x51   :  { %191 = vmatmul.mubr.f32.gmra.mrb[4].mxu0 %v1122_v27 }
  0x52   :  { %196 = vmatprep.mubr.f32.mxu0 %v1039_v0 }
  0x55   :  { %197 = vmatmul.mubr.f32.gmra.mrb[6].mxu0 %v1129_v28 }
  0x56   :  { %202 = vmatprep.mubr.f32.mxu0 %v1039_v0 }
  0x59   :  { %203 = vmatmul.mubr.f32.gmra.mrb[8].mxu0 %v1136_v29 }
  0x5a   :  { %208 = vmatprep.mubr.f32.mxu0 %v1039_v0 }
  0x5d   :  { %209 = vmatmul.mubr.f32.gmra.mrb[10].mxu0 %v1143_v30 }
  0x5e   :  { %214 = vmatprep.mubr.f32.mxu0 %v1039_v0 }
  0x61   :  { %215 = vmatmul.mubr.f32.gmra.mrb[12].mxu0 %v1150_v31 }
  0x62   :  { %220 = vmatprep.mubr.f32.mxu0 %v1039_v0 }
  0x65   :  { %221 = vmatmul.mubr.f32.gmra.mrb[14].mxu0 %v1157_v32 }
  0x66   :  { %226 = vmatprep.mubr.f32.mxu0 %v1039_v0 }
  0x69   :  { %227 = vmatmul.mubr.f32.gmra.mrb[16].mxu0 %v1164_v33 }
  0x6a   :  { %232 = vmatprep.mubr.f32.mxu0 %v1039_v0 }
  0x6d   :  { %233 = vmatmul.mubr.f32.gmra.mrb[18].mxu0 %v1171_v34 }
  0x6e   :  { %238 = vmatprep.mubr.f32.mxu0 %v1039_v0 }
  0x71   :  { %239 = vmatmul.mubr.f32.gmra.mrb[20].mxu0 %v1178_v35 }
  0x72   :  { %244 = vmatprep.mubr.f32.mxu0 %v1039_v0 }
  0x75   :  { %245 = vmatmul.mubr.f32.gmra.mrb[22].mxu0 %v1185_v36 }
  0x76   :  { %250 = vmatprep.mubr.f32.mxu0 %v1039_v0 }
  0x79   :  { %251 = vmatmul.mubr.f32.gmra.mrb[24].mxu0 %v1192_v37 }
  0x7a   :  { %256 = vmatprep.mubr.f32.mxu0 %v1039_v0 }
  0x7d   :  { %257 = vmatmul.mubr.f32.gmra.mrb[26].mxu0 %v1199_v38 }
  0x7e   :  { %262 = vmatprep.mubr.f32.mxu0 %v1039_v0 }
  0x81   :  { %263 = vmatmul.mubr.f32.gmra.mrb[28].mxu0 %v1206_v39 }
  0x82   :  { %268 = vmatprep.mubr.f32.mxu0 %v1039_v0  ;;  %v104_v0 = vlaneseq }
  0x84   :  { %v105_v50 = vshrl.u32 %v104_v0, 7 }
  0x85   :  { %269 = vmatmul.mubr.f32.gmra.mrb[30].mxu0 %v1213_v40 }
  0x86   :  { %v106_v51 = vsub.s32 0, %v105_v50  ;;  %v110_v53 = vsub.s32 1, %v105_v50 }
  0x88   :  { %v1219_v54 = vrot.slane %v102_v52, %v106_v51  ;;  %v1221_v55 = vrot.slane %v102_v52, %v110_v53 }
 0x11c   :  { %v180_v56 = vpop.f32.mrb[0].mxu0 }
 0x11d   :  { %v181_v57 = vadd.f32 %v180_v56, %v1219_v54  ;;  %v182_v58 = vpop.f32.mrb[1].mxu0 }
 0x11e   :  { %v183_v59 = vadd.f32 %v182_v58, %v1221_v55 }
 0x11f   :  { %v275_v62 = vmax.f32 %v181_v57, 0.0 }
 0x120   :  { %v186_v60 = vpop.f32.mrb[2].mxu0  ;;  %v276_v61 = vmax.f32 %v183_v59, 0.0 }
 0x121   :  { %v187_v63 = vadd.f32 %v186_v60, %v1219_v54  ;;  %v188_v1 = vpop.f32.mrb[3].mxu0 }
 0x122   :  { %v189_v2 = vadd.f32 %v188_v1, %v1221_v55  ;;  %410 = vmatprep.mubr.f32.mxu1 %v276_v61 }
 0x123   :  { %411 = vmatmul.mubr.f32.vlgmr.msra.gmra.mrb[0].mxu1 %v275_v62  ;;  %v277_v5 = vmax.f32 %v187_v63, 0.0 }
 0x124   :  { %v278_v3 = vmax.f32 %v189_v2, 0.0  ;;  %v192_v4 = vpop.f32.mrb[4].mxu0 }
 0x125   :  { %v193_v6 = vadd.f32 %v192_v4, %v1219_v54  ;;  %v194_v7 = vpop.f32.mrb[5].mxu0 }
 0x126   :  { %v195_v8 = vadd.f32 %v194_v7, %v1221_v55  ;;  %415 = vmatprep.mubr.f32.mxu1 %v278_v3 }
 0x127   :  { %v279_v9 = vmax.f32 %v193_v6, 0.0  ;;  %416 = vmatmul.mubr.f32.gmra.mrb[2].mxu1 %v277_v5 }
 0x128   :  { %v280_v10 = vmax.f32 %v195_v8, 0.0  ;;  %v198_v11 = vpop.f32.mrb[6].mxu0 }
 0x129   :  { %v199_v12 = vadd.f32 %v198_v11, %v1219_v54  ;;  %v200_v13 = vpop.f32.mrb[7].mxu0 }
 0x12a   :  { %v201_v14 = vadd.f32 %v200_v13, %v1221_v55  ;;  %420 = vmatprep.mubr.f32.mxu1 %v280_v10 }
 0x12b   :  { %v281_v15 = vmax.f32 %v199_v12, 0.0  ;;  %421 = vmatmul.mubr.f32.gmra.mrb[4].mxu1 %v279_v9 }
 0x12c   :  { %v282_v16 = vmax.f32 %v201_v14, 0.0  ;;  %v204_v18 = vpop.f32.mrb[8].mxu0 }
 0x12d   :  { %v205_v19 = vadd.f32 %v204_v18, %v1219_v54  ;;  %v206_v20 = vpop.f32.mrb[9].mxu0 }
 0x12e   :  { %v207_v21 = vadd.f32 %v206_v20, %v1221_v55  ;;  %425 = vmatprep.mubr.f32.mxu1 %v282_v16 }
 0x12f   :  { %v283_v22 = vmax.f32 %v205_v19, 0.0  ;;  %426 = vmatmul.mubr.f32.gmra.mrb[6].mxu1 %v281_v15 }
 0x130   :  { %v284_v23 = vmax.f32 %v207_v21, 0.0  ;;  %v210_v25 = vpop.f32.mrb[10].mxu0 }
 0x131   :  { %v211_v26 = vadd.f32 %v210_v25, %v1219_v54  ;;  %v212_v41 = vpop.f32.mrb[11].mxu0 }
 0x132   :  { %v213_v42 = vadd.f32 %v212_v41, %v1221_v55  ;;  %430 = vmatprep.mubr.f32.mxu1 %v284_v23 }
 0x133   :  { %v285_v43 = vmax.f32 %v211_v26, 0.0  ;;  %431 = vmatmul.mubr.f32.gmra.mrb[8].mxu1 %v283_v22 }
 0x134   :  { %v286_v44 = vmax.f32 %v213_v42, 0.0  ;;  %v216_v45 = vpop.f32.mrb[12].mxu0 }
 0x135   :  { %v217_v46 = vadd.f32 %v216_v45, %v1219_v54  ;;  %v218_v47 = vpop.f32.mrb[13].mxu0 }
 0x136   :  { %v219_v48 = vadd.f32 %v218_v47, %v1221_v55  ;;  %435 = vmatprep.mubr.f32.mxu1 %v286_v44 }
 0x137   :  { %v287_v49 = vmax.f32 %v217_v46, 0.0  ;;  %436 = vmatmul.mubr.f32.gmra.mrb[10].mxu1 %v285_v43 }
 0x138   :  { %v288_v0 = vmax.f32 %v219_v48, 0.0  ;;  %v222_v50 = vpop.f32.mrb[14].mxu0 }
 0x139   :  { %v223_v51 = vadd.f32 %v222_v50, %v1219_v54  ;;  %v224_v52 = vpop.f32.mrb[15].mxu0 }
 0x13a   :  { %v225_v53 = vadd.f32 %v224_v52, %v1221_v55  ;;  %440 = vmatprep.mubr.f32.mxu1 %v288_v0 }
 0x13b   :  { %v289_v56 = vmax.f32 %v223_v51, 0.0  ;;  %441 = vmatmul.mubr.f32.gmra.mrb[12].mxu1 %v287_v49 }
 0x13c   :  { %v290_v57 = vmax.f32 %v225_v53, 0.0  ;;  %v228_v58 = vpop.f32.mrb[16].mxu0 }
 0x13d   :  { %v229_v59 = vadd.f32 %v228_v58, %v1219_v54  ;;  %v230_v60 = vpop.f32.mrb[17].mxu0 }
 0x13e   :  { %v231_v61 = vadd.f32 %v230_v60, %v1221_v55  ;;  %445 = vmatprep.mubr.f32.mxu1 %v290_v57 }
 0x13f   :  { %v291_v62 = vmax.f32 %v229_v59, 0.0  ;;  %446 = vmatmul.mubr.f32.gmra.mrb[14].mxu1 %v289_v56 }
 0x140   :  { %v292_v63 = vmax.f32 %v231_v61, 0.0  ;;  %v234_v1 = vpop.f32.mrb[18].mxu0  ;;  %v1258_v61 = vld [vmem:[%s1537_s4] ss:$0 sm:$0xff] }
 0x141   :  { %v235_v2 = vadd.f32 %v234_v1, %v1219_v54  ;;  %v236_v3 = vpop.f32.mrb[19].mxu0 }
 0x142   :  { %v237_v4 = vadd.f32 %v236_v3, %v1221_v55  ;;  %450 = vmatprep.mubr.f32.mxu1 %v292_v63 }
 0x143   :  { %v293_v5 = vmax.f32 %v235_v2, 0.0  ;;  %451 = vmatmul.mubr.f32.gmra.mrb[16].mxu1 %v291_v62 }
 0x144   :  { %v294_v6 = vmax.f32 %v237_v4, 0.0  ;;  %v240_v7 = vpop.f32.mrb[20].mxu0 }
 0x145   :  { %v241_v8 = vadd.f32 %v240_v7, %v1219_v54  ;;  %v242_v9 = vpop.f32.mrb[21].mxu0 }
 0x146   :  { %v243_v10 = vadd.f32 %v242_v9, %v1221_v55  ;;  %455 = vmatprep.mubr.f32.mxu1 %v294_v6 }
 0x147   :  { %v295_v11 = vmax.f32 %v241_v8, 0.0  ;;  %456 = vmatmul.mubr.f32.gmra.mrb[18].mxu1 %v293_v5 }
 0x148   :  { %v296_v12 = vmax.f32 %v243_v10, 0.0  ;;  %v246_v13 = vpop.f32.mrb[22].mxu0 }
 0x149   :  { %v247_v14 = vadd.f32 %v246_v13, %v1219_v54  ;;  %v248_v15 = vpop.f32.mrb[23].mxu0 }
 0x14a   :  { %v249_v16 = vadd.f32 %v248_v15, %v1221_v55  ;;  %460 = vmatprep.mubr.f32.mxu1 %v296_v12 }
 0x14b   :  { %v297_v18 = vmax.f32 %v247_v14, 0.0  ;;  %461 = vmatmul.mubr.f32.gmra.mrb[20].mxu1 %v295_v11 }
 0x14c   :  { %v298_v19 = vmax.f32 %v249_v16, 0.0  ;;  %v252_v20 = vpop.f32.mrb[24].mxu0 }
 0x14d   :  { %v253_v21 = vadd.f32 %v252_v20, %v1219_v54  ;;  %v254_v22 = vpop.f32.mrb[25].mxu0 }
 0x14e   :  { %v255_v23 = vadd.f32 %v254_v22, %v1221_v55  ;;  %465 = vmatprep.mubr.f32.mxu1 %v298_v19 }
 0x14f   :  { %v299_v25 = vmax.f32 %v253_v21, 0.0  ;;  %466 = vmatmul.mubr.f32.gmra.mrb[22].mxu1 %v297_v18 }
 0x150   :  { %v300_v26 = vmax.f32 %v255_v23, 0.0  ;;  %v258_v41 = vpop.f32.mrb[26].mxu0 }
 0x151   :  { %v259_v42 = vadd.f32 %v258_v41, %v1219_v54  ;;  %v260_v43 = vpop.f32.mrb[27].mxu0 }
 0x152   :  { %v261_v44 = vadd.f32 %v260_v43, %v1221_v55  ;;  %470 = vmatprep.mubr.f32.mxu1 %v300_v26 }
 0x153   :  { %v301_v45 = vmax.f32 %v259_v42, 0.0  ;;  %471 = vmatmul.mubr.f32.gmra.mrb[24].mxu1 %v299_v25 }
 0x154   :  { %v302_v46 = vmax.f32 %v261_v44, 0.0  ;;  %v264_v47 = vpop.f32.mrb[28].mxu0 }
 0x155   :  { %v265_v48 = vadd.f32 %v264_v47, %v1219_v54  ;;  %v266_v49 = vpop.f32.mrb[29].mxu0 }
 0x156   :  { %v267_v0 = vadd.f32 %v266_v49, %v1221_v55  ;;  %475 = vmatprep.mubr.f32.mxu1 %v302_v46 }
 0x157   :  { %v303_v50 = vmax.f32 %v265_v48, 0.0  ;;  %476 = vmatmul.mubr.f32.gmra.mrb[26].mxu1 %v301_v45 }
 0x158   :  { %v304_v51 = vmax.f32 %v267_v0, 0.0  ;;  %v270_v52 = vpop.f32.mrb[30].mxu0 }
 0x159   :  { %v271_v53 = vadd.f32 %v270_v52, %v1219_v54  ;;  %v272_v56 = vpop.f32.mrb[31].mxu0 }
 0x15a   :  { %v273_v57 = vadd.f32 %v272_v56, %v1221_v55  ;;  %480 = vmatprep.mubr.f32.mxu1 %v304_v51 }
 0x15b   :  { %v305_v58 = vmax.f32 %v271_v53, 0.0  ;;  %481 = vmatmul.mubr.f32.gmra.mrb[28].mxu1 %v303_v50 }
 0x15c   :  { %v306_v59 = vmax.f32 %v273_v57, 0.0 }
 0x15e   :  { %485 = vmatprep.mubr.f32.mxu1 %v306_v59 }
 0x15f   :  { %486 = vmatmul.mubr.f32.gmra.mrb[30].mxu1 %v305_v58 }
 0x1f6   :  { %v834_v60 = vpop.f32.mrb[0].mxu1 }
 0x1f7   :  { %v835_v62 = vpop.f32.mrb[1].mxu1 }
 0x1f8   :  { %v836_v63 = vadd.f32 %v835_v62, %v834_v60 }
 0x1fa   :  { %v413_v1 = vadd.f32 %v836_v63, %v1258_v61  ;;  %v837_v54 = vpop.f32.mrb[2].mxu1 }
 0x1fb   :  { %v838_v2 = vpop.f32.mrb[3].mxu1 }
 0x1fc   :  { %v839_v3 = vadd.f32 %v838_v2, %v837_v54  ;;  %v1262_v55 = vadd.f32 %v413_v1, %v1108_v17 }
 0x1fe   :  { %v418_v4 = vadd.f32 %v839_v3, %v1258_v61  ;;  %v840_v5 = vpop.f32.mrb[4].mxu1  ;;  %509 = vadd.xlane.f32.xlu0 %v1262_v55  ;;  %v541_v8 = vmul.f32 %v1262_v55, %v1262_v55 }
 0x1ff   :  { %v841_v6 = vpop.f32.mrb[5].mxu1 }
 0x200   :  { %v842_v7 = vadd.f32 %v841_v6, %v840_v5  ;;  %v1269_v9 = vadd.f32 %v418_v4, %v1115_v24 }
 0x202   :  { %v423_v10 = vadd.f32 %v842_v7, %v1258_v61  ;;  %v843_v11 = vpop.f32.mrb[6].mxu1  ;;  %557 = vadd.xlane.f32.xlu0 %v541_v8  ;;  %v542_v17 = vmul.f32 %v1269_v9, %v1269_v9 }
 0x203   :  { %v844_v12 = vpop.f32.mrb[7].mxu1 }
 0x204   :  { %v845_v13 = vadd.f32 %v844_v12, %v843_v11  ;;  %559 = vadd.xlane.f32.xlu1 %v542_v17  ;;  %v1275_v14 = vadd.f32 %v423_v10, %v1122_v27 }
 0x206   :  { %v428_v15 = vadd.f32 %v845_v13, %v1258_v61  ;;  %v846_v16 = vpop.f32.mrb[8].mxu1  ;;  %511 = vadd.xlane.f32.xlu0 %v1269_v9  ;;  %v543_v19 = vmul.f32 %v1275_v14, %v1275_v14 }
 0x207   :  { %v847_v24 = vpop.f32.mrb[9].mxu1 }
 0x208   :  { %v848_v18 = vadd.f32 %v847_v24, %v846_v16  ;;  %513 = vadd.xlane.f32.xlu1 %v1275_v14  ;;  %v1284_v22 = vadd.f32 %v428_v15, %v1129_v28 }
 0x20a   :  { %v433_v20 = vadd.f32 %v848_v18, %v1258_v61  ;;  %v849_v21 = vpop.f32.mrb[10].mxu1  ;;  %561 = vadd.xlane.f32.xlu0 %v543_v19  ;;  %v544_v42 = vmul.f32 %v1284_v22, %v1284_v22 }
 0x20b   :  { %v850_v27 = vpop.f32.mrb[11].mxu1 }
 0x20c   :  { %v851_v23 = vadd.f32 %v850_v27, %v849_v21  ;;  %515 = vadd.xlane.f32.xlu1 %v1284_v22  ;;  %v1288_v25 = vadd.f32 %v433_v20, %v1136_v29 }
 0x20e   :  { %v438_v26 = vadd.f32 %v851_v23, %v1258_v61  ;;  %v852_v41 = vpop.f32.mrb[12].mxu1  ;;  %517 = vadd.xlane.f32.xlu0 %v1288_v25  ;;  %v545_v28 = vmul.f32 %v1288_v25, %v1288_v25 }
 0x20f   :  { %v853_v43 = vpop.f32.mrb[13].mxu1 }
 0x210   :  { %v854_v44 = vadd.f32 %v853_v43, %v852_v41  ;;  %563 = vadd.xlane.f32.xlu1 %v544_v42  ;;  %v1298_v29 = vadd.f32 %v438_v26, %v1143_v30 }
 0x212   :  { %v443_v45 = vadd.f32 %v854_v44, %v1258_v61  ;;  %v855_v46 = vpop.f32.mrb[14].mxu1  ;;  %565 = vadd.xlane.f32.xlu0 %v545_v28  ;;  %v546_v51 = vmul.f32 %v1298_v29, %v1298_v29 }
 0x213   :  { %v856_v47 = vpop.f32.mrb[15].mxu1 }
 0x214   :  { %v857_v48 = vadd.f32 %v856_v47, %v855_v46  ;;  %519 = vadd.xlane.f32.xlu1 %v1298_v29  ;;  %v1302_v49 = vadd.f32 %v443_v45, %v1150_v31 }
 0x216   :  { %v448_v0 = vadd.f32 %v857_v48, %v1258_v61  ;;  %v858_v50 = vpop.f32.mrb[16].mxu1  ;;  %521 = vadd.xlane.f32.xlu0 %v1302_v49  ;;  %v547_v30 = vmul.f32 %v1302_v49, %v1302_v49 }
 0x217   :  { %v859_v52 = vpop.f32.mrb[17].mxu1 }
 0x218   :  { %v860_v53 = vadd.f32 %v859_v52, %v858_v50  ;;  %567 = vadd.xlane.f32.xlu1 %v546_v51  ;;  %v1312_v31 = vadd.f32 %v448_v0, %v1157_v32 }
 0x21a   :  { %v453_v56 = vadd.f32 %v860_v53, %v1258_v61  ;;  %v861_v57 = vpop.f32.mrb[18].mxu1  ;;  %569 = vadd.xlane.f32.xlu0 %v547_v30  ;;  %v548_v1 = vmul.f32 %v1312_v31, %v1312_v31 }
 0x21b   :  { %v862_v58 = vpop.f32.mrb[19].mxu1 }
 0x21c   :  { %v863_v59 = vadd.f32 %v862_v58, %v861_v57  ;;  %523 = vadd.xlane.f32.xlu1 %v1312_v31  ;;  %v1316_v60 = vadd.f32 %v453_v56, %v1164_v33 }
 0x21e   :  { %v458_v62 = vadd.f32 %v863_v59, %v1258_v61  ;;  %v864_v63 = vpop.f32.mrb[20].mxu1  ;;  %525 = vadd.xlane.f32.xlu0 %v1316_v60  ;;  %v549_v32 = vmul.f32 %v1316_v60, %v1316_v60 }
 0x21f   :  { %v865_v54 = vpop.f32.mrb[21].mxu1 }
 0x220   :  { %v866_v2 = vadd.f32 %v865_v54, %v864_v63  ;;  %571 = vadd.xlane.f32.xlu1 %v548_v1  ;;  %v1326_v33 = vadd.f32 %v458_v62, %v1171_v34 }
 0x222   :  { %v463_v3 = vadd.f32 %v866_v2, %v1258_v61  ;;  %v867_v4 = vpop.f32.mrb[22].mxu1  ;;  %573 = vadd.xlane.f32.xlu0 %v549_v32  ;;  %v550_v11 = vmul.f32 %v1326_v33, %v1326_v33 }
 0x223   :  { %v868_v5 = vpop.f32.mrb[23].mxu1 }
 0x224   :  { %v869_v6 = vadd.f32 %v868_v5, %v867_v4  ;;  %527 = vadd.xlane.f32.xlu1 %v1326_v33  ;;  %v1330_v7 = vadd.f32 %v463_v3, %v1178_v35 }
 0x226   :  { %v468_v8 = vadd.f32 %v869_v6, %v1258_v61  ;;  %v870_v10 = vpop.f32.mrb[24].mxu1  ;;  %529 = vadd.xlane.f32.xlu0 %v1330_v7  ;;  %v551_v34 = vmul.f32 %v1330_v7, %v1330_v7 }
 0x227   :  { %v871_v17 = vpop.f32.mrb[25].mxu1 }
 0x228   :  { %v872_v12 = vadd.f32 %v871_v17, %v870_v10  ;;  %575 = vadd.xlane.f32.xlu1 %v550_v11  ;;  %v1340_v35 = vadd.f32 %v468_v8, %v1185_v36 }
 0x22a   :  { %v473_v13 = vadd.f32 %v872_v12, %v1258_v61  ;;  %v873_v15 = vpop.f32.mrb[26].mxu1  ;;  %577 = vadd.xlane.f32.xlu0 %v551_v34  ;;  %v552_v21 = vmul.f32 %v1340_v35, %v1340_v35 }
 0x22b   :  { %v874_v16 = vpop.f32.mrb[27].mxu1 }
 0x22c   :  { %v875_v24 = vadd.f32 %v874_v16, %v873_v15  ;;  %531 = vadd.xlane.f32.xlu1 %v1340_v35  ;;  %v1344_v18 = vadd.f32 %v473_v13, %v1192_v37 }
 0x22e   :  { %v478_v19 = vadd.f32 %v875_v24, %v1258_v61  ;;  %v876_v20 = vpop.f32.mrb[28].mxu1  ;;  %533 = vadd.xlane.f32.xlu0 %v1344_v18  ;;  %v553_v36 = vmul.f32 %v1344_v18, %v1344_v18 }
 0x22f   :  { %v877_v27 = vpop.f32.mrb[29].mxu1 }
 0x230   :  { %v878_v23 = vadd.f32 %v877_v27, %v876_v20  ;;  %579 = vadd.xlane.f32.xlu1 %v552_v21  ;;  %v1354_v37 = vadd.f32 %v478_v19, %v1199_v38 }
 0x232   :  { %v483_v26 = vadd.f32 %v878_v23, %v1258_v61  ;;  %v879_v41 = vpop.f32.mrb[30].mxu1  ;;  %581 = vadd.xlane.f32.xlu0 %v553_v36  ;;  %v554_v45 = vmul.f32 %v1354_v37, %v1354_v37  ;;  %v1384_v23 = vld [vmem:[%s1538_s5] ss:$0 sm:$0xff] }
 0x233   :  { %v880_v42 = vpop.f32.mrb[31].mxu1 }
 0x234   :  { %v881_v43 = vadd.f32 %v880_v42, %v879_v41  ;;  %535 = vadd.xlane.f32.xlu1 %v1354_v37  ;;  %v1358_v44 = vadd.f32 %v483_v26, %v1206_v39 }
 0x236   :  { %v488_v28 = vadd.f32 %v881_v43, %v1258_v61  ;;  %537 = vadd.xlane.f32.xlu0 %v1358_v44  ;;  %v555_v46 = vmul.f32 %v1358_v44, %v1358_v44 }
 0x238   :  { %583 = vadd.xlane.f32.xlu1 %v554_v45  ;;  %v1367_v38 = vadd.f32 %v488_v28, %v1213_v40  ;;  %v1391_v28 = vld [vmem:[%s1539_s6] ss:$0 sm:$0xff] }
 0x23a   :  { %585 = vadd.xlane.f32.xlu0 %v555_v46  ;;  %v556_v39 = vmul.f32 %v1367_v38, %v1367_v38 }
 0x23c   :  { %539 = vadd.xlane.f32.xlu1 %v1367_v38 }
 0x240   :  { %587 = vadd.xlane.f32.xlu1 %v556_v39 }
 0x28b   :  { %v510_v61 = vpop.xlane.xlu0 %509 }
 0x28c   :  { %v589_v47 = vmul.f32 0.0078125, %v510_v61 }
 0x28e   :  { %v621_v0 = vmul.f32 %v589_v47, %v589_v47  ;;  %v669_v20 = vsub.f32 %v1262_v55, %v589_v47 }
 0x28f   :  { %v558_v48 = vpop.xlane.xlu0 %557 }
 0x290   :  { %v605_v50 = vmul.f32 0.0078125, %v558_v48 }
 0x291   :  { %v560_v51 = vpop.xlane.xlu1 %559 }
 0x292   :  { %v637_v52 = vsub.f32 %v605_v50, %v621_v0  ;;  %v606_v40 = vmul.f32 0.0078125, %v560_v51 }
 0x293   :  { %v512_v53 = vpop.xlane.xlu0 %511 }
 0x294   :  { %v653_v30 = vmax.f32 %v637_v52, 0.0  ;;  %v590_v56 = vmul.f32 0.0078125, %v512_v53 }
 0x295   :  { %v514_v57 = vpop.xlane.xlu1 %513 }
 0x296   :  { %v685_v58 = vadd.f32 1e-05, %v653_v30  ;;  %v622_v59 = vmul.f32 %v590_v56, %v590_v56  ;;  %v591_v62 = vmul.f32 0.0078125, %v514_v57  ;;  %v670_v51 = vsub.f32 %v1269_v9, %v590_v56 }
 0x297   :  { %v562_v63 = vpop.xlane.xlu0 %561 }
 0x298   :  { %953 = vrsqrt.f32 %v685_v58  ;;  %v638_v1 = vsub.f32 %v606_v40, %v622_v59  ;;  %v623_v54 = vmul.f32 %v591_v62, %v591_v62  ;;  %v607_v2 = vmul.f32 0.0078125, %v562_v63 }
 0x299   :  { %v516_v32 = vpop.xlane.xlu1 %515  ;;  %v671_v63 = vsub.f32 %v1275_v14, %v591_v62 }
 0x29a   :  { %v654_v3 = vmax.f32 %v638_v1, 0.0  ;;  %v1372_v4 = vmul.f32 0.0078125, %v516_v32  ;;  %v639_v5 = vsub.f32 %v607_v2, %v623_v54 }
 0x29b   :  { %v518_v6 = vpop.xlane.xlu0 %517 }
 0x29c   :  { %v686_v8 = vadd.f32 1e-05, %v654_v3  ;;  %v1374_v10 = vmul.f32 0.0078125, %v518_v6  ;;  %v655_v11 = vmax.f32 %v639_v5, 0.0  ;;  %v624_v12 = vmul.f32 %v1372_v4, %v1372_v4 }
 0x29d   :  { %v564_v17 = vpop.xlane.xlu1 %563 }
 0x29e   :  { %955 = vrsqrt.f32 %v686_v8  ;;  %v608_v34 = vmul.f32 0.0078125, %v564_v17  ;;  %v687_v13 = vadd.f32 1e-05, %v655_v11  ;;  %v625_v16 = vmul.f32 %v1374_v10, %v1374_v10 }
 0x29f   :  { %v566_v15 = vpop.xlane.xlu0 %565 }
 0x2a0   :  { %v640_v24 = vsub.f32 %v608_v34, %v624_v12  ;;  %v609_v19 = vmul.f32 0.0078125, %v566_v15  ;;  %957 = vrsqrt.f32 %v687_v13  ;;  %v672_v13 = vsub.f32 %v1284_v22, %v1372_v4 }
 0x2a1   :  { %v520_v21 = vpop.xlane.xlu1 %519 }
 0x2a2   :  { %v954_v27 = vpop.eup %953  ;;  %v656_v36 = vmax.f32 %v640_v24, 0.0  ;;  %v641_v26 = vsub.f32 %v609_v19, %v625_v16  ;;  %v1386_v41 = vmul.f32 0.0078125, %v520_v21 }
 0x2a3   :  { %v717_v42 = vmul.f32 %v954_v27, %v669_v20  ;;  %v522_v43 = vpop.xlane.xlu0 %521  ;;  %v673_v27 = vsub.f32 %v1288_v25, %v1374_v10 }
 0x2a4   :  { %v688_v55 = vadd.f32 1e-05, %v656_v36  ;;  %v657_v45 = vmax.f32 %v641_v26, 0.0  ;;  %v1394_v39 = vmul.f32 0.0078125, %v522_v43  ;;  %v626_v48 = vmul.f32 %v1386_v41, %v1386_v41 }
 0x2a5   :  { %v739_v46 = vmul.f32 %v1384_v23, %v717_v42  ;;  %v568_v61 = vpop.xlane.xlu1 %567 }
 0x2a6   :  { %959 = vrsqrt.f32 %v688_v55  ;;  %v689_v47 = vadd.f32 1e-05, %v657_v45  ;;  %v610_v0 = vmul.f32 0.0078125, %v568_v61  ;;  %v627_v30 = vmul.f32 %v1394_v39, %v1394_v39 }
 0x2a7   :  { %v761_v50 = vadd.f32 %v1391_v28, %v739_v46  ;;  %v570_v52 = vpop.xlane.xlu0 %569 }
 0x2a8   :  { %v956_v53 = vpop.eup %955  ;;  %961 = vrsqrt.f32 %v689_v47  ;;  %v642_v57 = vsub.f32 %v610_v0, %v626_v48  ;;  %v611_v58 = vmul.f32 0.0078125, %v570_v52 }
 0x2a9   :  { %777 = vst [vmem:[%s1540_s7] sm:$0xff] %v761_v50  ;;  %v718_v40 = vmul.f32 %v956_v53, %v670_v51  ;;  %v524_v59 = vpop.xlane.xlu1 %523 }
 0x2aa   :  { %v658_v1 = vmax.f32 %v642_v57, 0.0  ;;  %v643_v54 = vsub.f32 %v611_v58, %v627_v30  ;;  %v1406_v2 = vmul.f32 0.0078125, %v524_v59  ;;  %v958_v9 = vpop.eup %957  ;;  %v674_v30 = vsub.f32 %v1298_v29, %v1386_v41 }
 0x2ab   :  { %v740_v56 = vmul.f32 %v1384_v23, %v718_v40  ;;  %v526_v32 = vpop.xlane.xlu0 %525  ;;  %v719_v3 = vmul.f32 %v958_v9, %v671_v63 }
 0x2ac   :  { %v690_v5 = vadd.f32 1e-05, %v658_v1  ;;  %v659_v6 = vmax.f32 %v643_v54, 0.0  ;;  %v628_v11 = vmul.f32 %v1406_v2, %v1406_v2  ;;  %v1412_v17 = vmul.f32 0.0078125, %v526_v32 }
 0x2ad   :  { %v762_v8 = vadd.f32 %v1391_v28, %v740_v56  ;;  %v572_v12 = vpop.xlane.xlu1 %571  ;;  %v741_v14 = vmul.f32 %v1384_v23, %v719_v3  ;;  %v675_v1 = vsub.f32 %v1302_v49, %v1394_v39 }
 0x2ae   :  { %963 = vrsqrt.f32 %v690_v5  ;;  %v691_v62 = vadd.f32 1e-05, %v659_v6  ;;  %v612_v34 = vmul.f32 0.0078125, %v572_v12  ;;  %v629_v15 = vmul.f32 %v1412_v17, %v1412_v17 }
 0x2af   :  { %778 = vst [vmem:[%s1540_s7 + $0x8] sm:$0xff] %v762_v8  ;;  %v574_v16 = vpop.xlane.xlu0 %573  ;;  %v763_v19 = vadd.f32 %v1391_v28, %v741_v14 }
 0x2b0   :  { %v960_v24 = vpop.eup %959  ;;  %965 = vrsqrt.f32 %v691_v62  ;;  %v644_v20 = vsub.f32 %v612_v34, %v628_v11  ;;  %v613_v21 = vmul.f32 0.0078125, %v574_v16  ;;  %v676_v16 = vsub.f32 %v1312_v31, %v1406_v2 }
 0x2b1   :  { %v720_v36 = vmul.f32 %v960_v24, %v672_v13  ;;  %v528_v26 = vpop.xlane.xlu1 %527  ;;  %779 = vst [vmem:[%s1540_s7 + $0x10] sm:$0xff] %v763_v19 }
 0x2b2   :  { %v962_v42 = vpop.eup %961  ;;  %v660_v22 = vmax.f32 %v644_v20, 0.0  ;;  %v645_v4 = vsub.f32 %v613_v21, %v629_v15  ;;  %v1428_v43 = vmul.f32 0.0078125, %v528_v26 }
 0x2b3   :  { %v742_v55 = vmul.f32 %v1384_v23, %v720_v36  ;;  %v721_v45 = vmul.f32 %v962_v42, %v673_v27  ;;  %v530_v46 = vpop.xlane.xlu0 %529  ;;  %v677_v36 = vsub.f32 %v1316_v60, %v1412_v17 }
 0x2b4   :  { %v692_v61 = vadd.f32 1e-05, %v660_v22  ;;  %v661_v47 = vmax.f32 %v645_v4, 0.0  ;;  %v1433_v10 = vmul.f32 0.0078125, %v530_v46  ;;  %v630_v51 = vmul.f32 %v1428_v43, %v1428_v43 }
 0x2b5   :  { %v764_v48 = vadd.f32 %v1391_v28, %v742_v55  ;;  %v743_v25 = vmul.f32 %v1384_v23, %v721_v45  ;;  %v576_v0 = vpop.xlane.xlu1 %575 }
 0x2b6   :  { %967 = vrsqrt.f32 %v692_v61  ;;  %v693_v50 = vadd.f32 1e-05, %v661_v47  ;;  %v614_v52 = vmul.f32 0.0078125, %v576_v0  ;;  %v631_v40 = vmul.f32 %v1433_v10, %v1433_v10 }
 0x2b7   :  { %780 = vst [vmem:[%s1540_s7 + $0x18] sm:$0xff] %v764_v48  ;;  %v765_v53 = vadd.f32 %v1391_v28, %v743_v25  ;;  %v578_v57 = vpop.xlane.xlu0 %577 }
 0x2b8   :  { %v964_v58 = vpop.eup %963  ;;  %969 = vrsqrt.f32 %v693_v50  ;;  %v646_v59 = vsub.f32 %v614_v52, %v630_v51  ;;  %v615_v63 = vmul.f32 0.0078125, %v578_v57 }
 0x2b9   :  { %781 = vst [vmem:[%s1540_s7 + $0x20] sm:$0xff] %v765_v53  ;;  %v722_v54 = vmul.f32 %v964_v58, %v674_v30  ;;  %v532_v9 = vpop.xlane.xlu1 %531  ;;  %v678_v53 = vsub.f32 %v1326_v33, %v1428_v43 }
 0x2ba   :  { %v966_v56 = vpop.eup %965  ;;  %v662_v32 = vmax.f32 %v646_v59, 0.0  ;;  %v647_v29 = vsub.f32 %v615_v63, %v631_v40  ;;  %v1450_v41 = vmul.f32 0.0078125, %v532_v9  ;;  %v679_v63 = vsub.f32 %v1330_v7, %v1433_v10 }
 0x2bb   :  { %v744_v3 = vmul.f32 %v1384_v23, %v722_v54  ;;  %v723_v5 = vmul.f32 %v966_v56, %v675_v1  ;;  %v534_v6 = vpop.xlane.xlu0 %533 }
 0x2bc   :  { %v694_v8 = vadd.f32 1e-05, %v662_v32  ;;  %v663_v11 = vmax.f32 %v647_v29, 0.0  ;;  %v1455_v62 = vmul.f32 0.0078125, %v534_v6  ;;  %v632_v34 = vmul.f32 %v1450_v41, %v1450_v41 }
 0x2bd   :  { %v766_v12 = vadd.f32 %v1391_v28, %v744_v3  ;;  %v745_v14 = vmul.f32 %v1384_v23, %v723_v5  ;;  %v580_v49 = vpop.xlane.xlu1 %579 }
 0x2be   :  { %971 = vrsqrt.f32 %v694_v8  ;;  %v695_v39 = vadd.f32 1e-05, %v663_v11  ;;  %v616_v13 = vmul.f32 0.0078125, %v580_v49  ;;  %v633_v20 = vmul.f32 %v1455_v62, %v1455_v62 }
 0x2bf   :  { %782 = vst [vmem:[%s1540_s7 + $0x28] sm:$0xff] %v766_v12  ;;  %v767_v15 = vadd.f32 %v1391_v28, %v745_v14  ;;  %v582_v24 = vpop.xlane.xlu0 %581  ;;  %v680_v49 = vsub.f32 %v1340_v35, %v1450_v41 }
 0x2c0   :  { %v968_v19 = vpop.eup %967  ;;  %973 = vrsqrt.f32 %v695_v39  ;;  %v648_v21 = vsub.f32 %v616_v13, %v632_v34  ;;  %v617_v27 = vmul.f32 0.0078125, %v582_v24  ;;  %v681_v13 = vsub.f32 %v1344_v18, %v1455_v62 }
 0x2c1   :  { %783 = vst [vmem:[%s1540_s7 + $0x30] sm:$0xff] %v767_v15  ;;  %v724_v26 = vmul.f32 %v968_v19, %v676_v16  ;;  %v536_v42 = vpop.xlane.xlu1 %535 }
 0x2c2   :  { %v970_v22 = vpop.eup %969  ;;  %v664_v4 = vmax.f32 %v648_v21, 0.0  ;;  %v649_v31 = vsub.f32 %v617_v27, %v633_v20  ;;  %v1472_v2 = vmul.f32 0.0078125, %v536_v42 }
 0x2c3   :  { %v746_v55 = vmul.f32 %v1384_v23, %v724_v26  ;;  %v725_v45 = vmul.f32 %v970_v22, %v677_v36  ;;  %v538_v46 = vpop.xlane.xlu0 %537 }
 0x2c4   :  { %v696_v61 = vadd.f32 1e-05, %v664_v4  ;;  %v665_v47 = vmax.f32 %v649_v31, 0.0  ;;  %v603_v0 = vmul.f32 0.0078125, %v538_v46  ;;  %v634_v17 = vmul.f32 %v1472_v2, %v1472_v2 }
 0x2c5   :  { %v768_v48 = vadd.f32 %v1391_v28, %v746_v55  ;;  %v747_v25 = vmul.f32 %v1384_v23, %v725_v45  ;;  %v584_v50 = vpop.xlane.xlu1 %583  ;;  %v682_v18 = vsub.f32 %v1354_v37, %v1472_v2 }
 0x2c6   :  { %975 = vrsqrt.f32 %v696_v61  ;;  %v697_v60 = vadd.f32 1e-05, %v665_v47  ;;  %v618_v51 = vmul.f32 0.0078125, %v584_v50  ;;  %v635_v58 = vmul.f32 %v603_v0, %v603_v0 }
 0x2c7   :  { %784 = vst [vmem:[%s1540_s7 + $0x38] sm:$0xff] %v768_v48  ;;  %v769_v52 = vadd.f32 %v1391_v28, %v747_v25  ;;  %v586_v30 = vpop.xlane.xlu0 %585  ;;  %v683_v36 = vsub.f32 %v1358_v44, %v603_v0 }
 0x2c8   :  { %v972_v57 = vpop.eup %971  ;;  %977 = vrsqrt.f32 %v697_v60  ;;  %v650_v40 = vsub.f32 %v618_v51, %v634_v17  ;;  %v619_v59 = vmul.f32 0.0078125, %v586_v30 }
 0x2c9   :  { %785 = vst [vmem:[%s1540_s7 + $0x40] sm:$0xff] %v769_v52  ;;  %v726_v1 = vmul.f32 %v972_v57, %v678_v53  ;;  %v540_v54 = vpop.xlane.xlu1 %539 }
 0x2ca   :  { %v974_v9 = vpop.eup %973  ;;  %v666_v56 = vmax.f32 %v650_v40, 0.0  ;;  %v651_v32 = vsub.f32 %v619_v59, %v635_v58  ;;  %v604_v29 = vmul.f32 0.0078125, %v540_v54 }
 0x2cb   :  { %v748_v33 = vmul.f32 %v1384_v23, %v726_v1  ;;  %v727_v43 = vmul.f32 %v974_v9, %v679_v63 }
 0x2cc   :  { %v698_v3 = vadd.f32 1e-05, %v666_v56  ;;  %v667_v5 = vmax.f32 %v651_v32, 0.0  ;;  %v636_v14 = vmul.f32 %v604_v29, %v604_v29  ;;  %v684_v2 = vsub.f32 %v1367_v38, %v604_v29 }
 0x2cd   :  { %v770_v6 = vadd.f32 %v1391_v28, %v748_v33  ;;  %v749_v8 = vmul.f32 %v1384_v23, %v727_v43  ;;  %v588_v11 = vpop.xlane.xlu1 %587 }
 0x2ce   :  { %979 = vrsqrt.f32 %v698_v3  ;;  %v699_v12 = vadd.f32 1e-05, %v667_v5  ;;  %v620_v7 = vmul.f32 0.0078125, %v588_v11 }
 0x2cf   :  { %786 = vst [vmem:[%s1540_s7 + $0x48] sm:$0xff] %v770_v6  ;;  %v771_v10 = vadd.f32 %v1391_v28, %v749_v8 }
 0x2d0   :  { %v976_v39 = vpop.eup %975  ;;  %981 = vrsqrt.f32 %v699_v12  ;;  %v652_v34 = vsub.f32 %v620_v7, %v636_v14 }
 0x2d1   :  { %787 = vst [vmem:[%s1540_s7 + $0x50] sm:$0xff] %v771_v10  ;;  %v728_v15 = vmul.f32 %v976_v39, %v680_v49 }
 0x2d2   :  { %v978_v16 = vpop.eup %977  ;;  %v668_v24 = vmax.f32 %v652_v34, 0.0 }
 0x2d3   :  { %v750_v19 = vmul.f32 %v1384_v23, %v728_v15  ;;  %v729_v20 = vmul.f32 %v978_v16, %v681_v13 }
 0x2d4   :  { %v700_v21 = vadd.f32 1e-05, %v668_v24 }
 0x2d5   :  { %v772_v27 = vadd.f32 %v1391_v28, %v750_v19  ;;  %v751_v35 = vmul.f32 %v1384_v23, %v729_v20 }
 0x2d6   :  { %983 = vrsqrt.f32 %v700_v21 }
 0x2d7   :  { %788 = vst [vmem:[%s1540_s7 + $0x58] sm:$0xff] %v772_v27  ;;  %v773_v41 = vadd.f32 %v1391_v28, %v751_v35 }
 0x2d8   :  { %v980_v62 = vpop.eup %979 }
 0x2d9   :  { %789 = vst [vmem:[%s1540_s7 + $0x60] sm:$0xff] %v773_v41  ;;  %v730_v26 = vmul.f32 %v980_v62, %v682_v18 }
 0x2da   :  { %v982_v42 = vpop.eup %981 }
 0x2db   :  { %v752_v22 = vmul.f32 %v1384_v23, %v730_v26  ;;  %v731_v4 = vmul.f32 %v982_v42, %v683_v36 }
 0x2dd   :  { %v774_v31 = vadd.f32 %v1391_v28, %v752_v22  ;;  %v753_v55 = vmul.f32 %v1384_v23, %v731_v4 }
 0x2df   :  { %790 = vst [vmem:[%s1540_s7 + $0x68] sm:$0xff] %v774_v31  ;;  %v775_v37 = vadd.f32 %v1391_v28, %v753_v55 }
 0x2e0   :  { %v984_v45 = vpop.eup %983 }
 0x2e1   :  { %791 = vst [vmem:[%s1540_s7 + $0x70] sm:$0xff] %v775_v37  ;;  %v732_v44 = vmul.f32 %v984_v45, %v684_v2 }
 0x2e3   :  { %v754_v46 = vmul.f32 %v1384_v23, %v732_v44 }
 0x2e5   :  { %v776_v61 = vadd.f32 %v1391_v28, %v754_v46 }
 0x2e7   :  { %792 = vst [vmem:[%s1540_s7 + $0x78] sm:$0xff] %v776_v61 }
 0x2e8   :  { %797 = vsyncpa [#allocation3], 1 }
 0x2e9   :  { %798 = vsyncpa [#allocation5], 1 }

</bundles_post_ra>
